<compile_context>
chip_gen: v7x
topology: tpu7x:2x2x1
jax: 0.10.0
libtpu: 0.0.40
codegen_flags: <defaults>
</compile_context>

<pallas_src>
import numpy as np

import jax
import jax.numpy as jnp
from jax.experimental import pallas as pl
from jax.experimental.pallas import tpu as pltpu


_LANES = 128
_VMEM_BUDGET = 8 * 1024 * 1024   # 2 operands x 2 pipeline buffers; comfortably under the
                                 # default scoped-VMEM limit on every TPU generation.
_MAX_S_TILE = 256                # 256 sublanes x 128 lanes = 32768 elems/class per tile —
                                 # well past the HBM-roofline knee, tiny per-step overhead.


def _make_bce_sum_kernel(C, s_tile, n_inner, hw, needs_mask):
    """Build a kernel accumulating per-class, per-lane sums of BCE-with-logits."""

    def kernel(p_ref, t_ref, out_ref):
        i = pl.program_id(2)

        @pl.when(i == 0)
        def _init():
            out_ref[...] = jnp.zeros_like(out_ref)

        x = p_ref[0].astype(jnp.float32)   # (C, s_tile, 128) logits
        y = t_ref[0].astype(jnp.float32)   # (C, s_tile, 128) targets

        # Numerically stable BCEWithLogits (matches torch.nn.BCEWithLogitsLoss):
        #   loss = max(x, 0) - x*y + log1p(exp(-|x|))
        # log1p is computed via a small-z series branch so precision is kept for
        # large |x| without relying on a dedicated log1p lowering.
        z = jnp.exp(-jnp.abs(x))
        log1p_z = jnp.where(z < 1e-4, z - 0.5 * z * z, jnp.log(1.0 + z))
        loss = jnp.maximum(x, 0.0) - x * y + log1p_z

        if needs_mask:
            # Zero contributions past the true element count `hw` (covers lane padding,
            # the ragged last sublane block, and clamped duplicate blocks).
            blk = pl.program_id(1) * n_inner + i
            base = blk * (s_tile * _LANES)
            s_idx = jax.lax.broadcasted_iota(jnp.int32, (1, s_tile, _LANES), 1)
            l_idx = jax.lax.broadcasted_iota(jnp.int32, (1, s_tile, _LANES), 2)
            flat = base + s_idx * _LANES + l_idx
            loss = jnp.where(flat < hw, loss, 0.0)

        # Reduce the sublane axis only; keep the 128-lane axis dense in the resident
        # accumulator.  The final lane fold + mean happen once, in the wrapper.
        out_ref[...] += jnp.sum(loss, axis=1)[None, None]   # (1, 1, C, 128)

    return kernel


def _pick_s_tile(total_s, C, itemsize, batch):
    """Largest 8-aligned sublane tile inside the VMEM budget (full row if it fits)."""
    max_s = _VMEM_BUDGET // (2 * 2 * C * _LANES * itemsize)   # 2 operands x 2 buffers
    max_s = max(8, (max_s // 8) * 8)
    if batch < 2 and total_s >= 16:
        # v7x: with batch 1 the batch grid axis cannot feed both TensorCores; keep at
        # least two spatial blocks so the outer spatial axis can be sharded instead.
        max_s = min(max_s, ((total_s + 1) // 2 + 7) // 8 * 8)
    if total_s <= max_s:
        return total_s            # single full-dim block (allowed by the (8,128) rule)
    return min(_MAX_S_TILE, max_s)


def ce_loss(predict, target, *, weight=None, ignore_index=None, num_classes=4):
    assert predict.shape == target.shape, "predict & target shape do not match"
    B, C = int(predict.shape[0]), int(predict.shape[1])
    assert C == num_classes, "channel count must equal num_classes"
    if weight is not None:
        assert len(weight) == num_classes, "do not match length of weight and # of classes"
    hw = int(np.prod(predict.shape[2:]))

    # Lane-dense view (B, C, total_S, 128).  Pure (free) reshape when hw % 128 == 0
    # (the common segmentation case); otherwise a one-off pad to the next lane
    # multiple — padded elements are masked out in-kernel.
    p = predict.reshape(B, C, hw)
    t = target.reshape(B, C, hw)
    hw128 = -(-hw // _LANES) * _LANES
    if hw128 != hw:
        p = jnp.pad(p, ((0, 0), (0, 0), (0, hw128 - hw)))
        t = jnp.pad(t, ((0, 0), (0, 0), (0, hw128 - hw)))
    total_s = hw128 // _LANES
    p = p.reshape(B, C, total_s, _LANES)
    t = t.reshape(B, C, total_s, _LANES)

    itemsize = max(jnp.dtype(predict.dtype).itemsize, jnp.dtype(target.dtype).itemsize)
    s_tile = _pick_s_tile(total_s, C, itemsize, B)
    n_blocks = -(-total_s // s_tile)

    # Parallel axes: batch plus an outer spatial shard (batch-1 inputs can still use
    # both v7x TensorCores).  The inner spatial axis carries the accumulator.
    n_outer = 1 if B >= 2 else min(n_blocks, 2)
    n_inner = -(-n_blocks // n_outer)

    needs_mask = (n_outer * n_inner * s_tile * _LANES) != hw

    def in_map(b, o, i):
        return (b, 0, jnp.minimum(o * n_inner + i, n_blocks - 1), 0)

    sums = pl.pallas_call(
        _make_bce_sum_kernel(C, s_tile, n_inner, hw, needs_mask),
        out_shape=jax.ShapeDtypeStruct((B, n_outer, C, _LANES), jnp.float32),
        grid_spec=pltpu.PrefetchScalarGridSpec(
            num_scalar_prefetch=0,
            grid=(B, n_outer, n_inner),
            in_specs=[pl.BlockSpec((1, C, s_tile, _LANES), in_map),
                      pl.BlockSpec((1, C, s_tile, _LANES), in_map)],
            out_specs=pl.BlockSpec((1, 1, C, _LANES), lambda b, o, i: (b, o, 0, 0)),
        ),
        compiler_params=pltpu.CompilerParams(
            dimension_semantics=("parallel", "parallel", "arbitrary")),
    )(p, t)

    # Per-class mean BCE over all B*hw elements of that class.
    per_class = jnp.sum(sums, axis=(0, 1, 3)) / jnp.float32(B * hw)   # (C,)

    if weight is not None:
        per_class = per_class * jnp.asarray(weight, jnp.float32)
    if ignore_index is not None:
        keep = jnp.array([i for i in range(num_classes) if i != ignore_index],
                         dtype=jnp.int32)
        per_class = per_class[keep]

    return jnp.mean(per_class)


def _reference(predict, target, weight=None, ignore_index=None, num_classes=4):
    """Plain numpy transcription of the PyTorch forward for validation."""
    x = np.asarray(predict, np.float64)
    y = np.asarray(target, np.float64)
    losses = []
    for i in range(num_classes):
        if i != ignore_index:
            xi = x[:, i].reshape(-1)
            yi = y[:, i].reshape(-1)
            li = (np.maximum(xi, 0.0) - xi * yi + np.log1p(np.exp(-np.abs(xi)))).mean()
            if weight is not None:
                li *= weight[i]
            losses.append(li)
    return np.float32(np.mean(losses))


if __name__ == "__main__":
    B, NC, H, W = 2, 4, 16, 16
    key = jax.random.PRNGKey(0)
    k1, k2, k3, k4 = jax.random.split(key, 4)

    predict = jax.random.normal(k1, (B, NC, H, W), jnp.float32)
    labels = jax.random.randint(k2, (B, H, W), 0, NC)
    target = (labels[:, None] ==
              jnp.arange(NC)[None, :, None, None]).astype(jnp.float32)

    # Default config (no weight / no ignore_index).
    out = jax.block_until_ready(ce_loss(predict, target, num_classes=NC))
    ref = _reference(np.asarray(predict), np.asarray(target), num_classes=NC)
    np.testing.assert_allclose(np.asarray(out), ref, rtol=1e-5, atol=1e-5)

    # Weighted config with one ignored class (same kernel, wrapper-only logic).
    w = [1.0, 2.0, 0.5, 1.5]
    out2 = jax.block_until_ready(
        ce_loss(predict, target, weight=w, ignore_index=2, num_classes=NC))
    ref2 = _reference(np.asarray(predict), np.asarray(target), weight=w,
                      ignore_index=2, num_classes=NC)
    np.testing.assert_allclose(np.asarray(out2), ref2, rtol=1e-5, atol=1e-5)

    # Odd spatial size + batch 1: exercises the lane-pad + in-kernel tail mask path.
    predict3 = jax.random.normal(k3, (1, NC, 13, 13), jnp.float32)
    labels3 = jax.random.randint(k4, (1, 13, 13), 0, NC)
    target3 = (labels3[:, None] ==
               jnp.arange(NC)[None, :, None, None]).astype(jnp.float32)
    out3 = jax.block_until_ready(ce_loss(predict3, target3, num_classes=NC))
    ref3 = _reference(np.asarray(predict3), np.asarray(target3), num_classes=NC)
    np.testing.assert_allclose(np.asarray(out3), ref3, rtol=1e-5, atol=1e-5)

    print("KERNEL_OK")
</pallas_src>

<mosaic_0001>
module attributes {stable_mosaic.version = 11 : i64} {
  func.func @kernel(%arg0: i32, %arg1: i32, %arg2: i32, %arg3: memref<1x4x2x128xf32, #tpu.memory_space<vmem>>, %arg4: memref<1x4x2x128xf32, #tpu.memory_space<vmem>>, %arg5: memref<1x1x4x128xf32, #tpu.memory_space<vmem>>) attributes {dimension_semantics = [#tpu.dimension_semantics<parallel>, #tpu.dimension_semantics<parallel>, #tpu.dimension_semantics<arbitrary>], iteration_bounds = array<i64: 2, 1, 1>, scalar_prefetch = 0 : i64, scratch_operands = 0 : i64, tpu.core_type = #tpu.core_type<tc>, window_params = [{transform_indices = @transform_0, window_bounds = array<i64: 1, 4, 2, 128>}, {transform_indices = @transform_1, window_bounds = array<i64: 1, 4, 2, 128>}, {transform_indices = @transform_2, window_bounds = array<i64: 1, 1, 4, 128>}]} {
    %c0_i32 = arith.constant 0 : i32
    %0 = arith.cmpi eq, %arg2, %c0_i32 : i32
    %1 = arith.extui %0 : i1 to i32
    %c0_i32_0 = arith.constant 0 : i32
    %2 = arith.cmpi ne, %1, %c0_i32_0 : i32
    scf.if %2 {
      %cst_21 = arith.constant 0.000000e+00 : f32
      %31 = vector.broadcast %cst_21 : f32 to vector<1x1x4x128xf32>
      %c0_22 = arith.constant 0 : index
      %c0_23 = arith.constant 0 : index
      %c0_24 = arith.constant 0 : index
      %c0_25 = arith.constant 0 : index
      %32 = vector.load %arg5[%c0_22, %c0_23, %c0_24, %c0_25] : memref<1x1x4x128xf32, #tpu.memory_space<vmem>>, vector<1x1x4x128xf32>
      tpu.vector_store %arg5[%c0_22, %c0_23, %c0_24, %c0_25], %31 {strides = array<i32>} : memref<1x1x4x128xf32, #tpu.memory_space<vmem>>, vector<1x1x4x128xf32>,
    } else {
    }
    %c0 = arith.constant 0 : index
    %c0_1 = arith.constant 0 : index
    %c0_2 = arith.constant 0 : index
    %c0_3 = arith.constant 0 : index
    %3 = vector.load %arg3[%c0, %c0_1, %c0_2, %c0_3] : memref<1x4x2x128xf32, #tpu.memory_space<vmem>>, vector<1x4x2x128xf32>
    %4 = vector.shape_cast %3 : vector<1x4x2x128xf32> to vector<4x2x128xf32>
    %c0_4 = arith.constant 0 : index
    %c0_5 = arith.constant 0 : index
    %c0_6 = arith.constant 0 : index
    %c0_7 = arith.constant 0 : index
    %5 = vector.load %arg4[%c0_4, %c0_5, %c0_6, %c0_7] : memref<1x4x2x128xf32, #tpu.memory_space<vmem>>, vector<1x4x2x128xf32>
    %6 = vector.shape_cast %5 : vector<1x4x2x128xf32> to vector<4x2x128xf32>
    %7 = math.absf %4 : vector<4x2x128xf32>
    %cst = arith.constant 0.000000e+00 : f32
    %8 = vector.broadcast %cst : f32 to vector<4x2x128xf32>
    %9 = arith.subf %8, %7 : vector<4x2x128xf32>
    %10 = math.exp %9 : vector<4x2x128xf32>
    %cst_8 = arith.constant 9.99999974E-5 : f32
    %11 = vector.broadcast %cst_8 : f32 to vector<4x2x128xf32>
    %12 = arith.cmpf olt, %10, %11 : vector<4x2x128xf32>
    %cst_9 = arith.constant 5.000000e-01 : f32
    %13 = vector.broadcast %cst_9 : f32 to vector<4x2x128xf32>
    %14 = arith.mulf %13, %10 : vector<4x2x128xf32>
    %15 = arith.mulf %14, %10 : vector<4x2x128xf32>
    %16 = arith.subf %10, %15 : vector<4x2x128xf32>
    %cst_10 = arith.constant 1.000000e+00 : f32
    %17 = vector.broadcast %cst_10 : f32 to vector<4x2x128xf32>
    %18 = arith.addf %17, %10 : vector<4x2x128xf32>
    %19 = math.log %18 : vector<4x2x128xf32>
    %20 = arith.select %12, %16, %19 : vector<4x2x128xi1>, vector<4x2x128xf32>
    %cst_11 = arith.constant 0.000000e+00 : f32
    %21 = vector.broadcast %cst_11 : f32 to vector<4x2x128xf32>
    %22 = arith.maximumf %4, %21 : vector<4x2x128xf32>
    %23 = arith.mulf %4, %6 : vector<4x2x128xf32>
    %24 = arith.subf %22, %23 : vector<4x2x128xf32>
    %25 = arith.addf %24, %20 : vector<4x2x128xf32>
    %c0_12 = arith.constant 0 : index
    %c0_13 = arith.constant 0 : index
    %c0_14 = arith.constant 0 : index
    %c0_15 = arith.constant 0 : index
    %26 = vector.load %arg5[%c0_12, %c0_13, %c0_14, %c0_15] : memref<1x1x4x128xf32, #tpu.memory_space<vmem>>, vector<1x1x4x128xf32>
    %cst_16 = arith.constant dense<0.000000e+00> : vector<4x128xf32>
    %27 = vector.multi_reduction <add>, %25, %cst_16 [1] : vector<4x2x128xf32> to vector<4x128xf32>
    %28 = vector.shape_cast %27 : vector<4x128xf32> to vector<1x1x4x128xf32>
    %29 = arith.addf %26, %28 : vector<1x1x4x128xf32>
    %c0_17 = arith.constant 0 : index
    %c0_18 = arith.constant 0 : index
    %c0_19 = arith.constant 0 : index
    %c0_20 = arith.constant 0 : index
    %30 = vector.load %arg5[%c0_17, %c0_18, %c0_19, %c0_20] : memref<1x1x4x128xf32, #tpu.memory_space<vmem>>, vector<1x1x4x128xf32>
    tpu.vector_store %arg5[%c0_17, %c0_18, %c0_19, %c0_20], %29 {strides = array<i32>} : memref<1x1x4x128xf32, #tpu.memory_space<vmem>>, vector<1x1x4x128xf32>,
    return
  }
  func.func @transform_0(%arg0: i32, %arg1: i32, %arg2: i32) -> (i32, i32, i32, i32) {
    %c1_i32 = arith.constant 1 : i32
    %0 = arith.muli %arg1, %c1_i32 : i32
    %1 = arith.addi %0, %arg2 : i32
    %c0_i32 = arith.constant 0 : i32
    %2 = arith.minsi %1, %c0_i32 : i32
    %c0_i32_0 = arith.constant 0 : i32
    %c0_i32_1 = arith.constant 0 : i32
    %c0_i32_2 = arith.constant 0 : i32
    return %arg0, %c0_i32_0, %2, %c0_i32_1 : i32, i32, i32, i32
  }
  func.func @transform_1(%arg0: i32, %arg1: i32, %arg2: i32) -> (i32, i32, i32, i32) {
    %c1_i32 = arith.constant 1 : i32
    %0 = arith.muli %arg1, %c1_i32 : i32
    %1 = arith.addi %0, %arg2 : i32
    %c0_i32 = arith.constant 0 : i32
    %2 = arith.minsi %1, %c0_i32 : i32
    %c0_i32_0 = arith.constant 0 : i32
    %c0_i32_1 = arith.constant 0 : i32
    %c0_i32_2 = arith.constant 0 : i32
    return %arg0, %c0_i32_0, %2, %c0_i32_1 : i32, i32, i32, i32
  }
  func.func @transform_2(%arg0: i32, %arg1: i32, %arg2: i32) -> (i32, i32, i32, i32) {
    %c0_i32 = arith.constant 0 : i32
    %c0_i32_0 = arith.constant 0 : i32
    %c0_i32_1 = arith.constant 0 : i32
    return %arg0, %arg1, %c0_i32, %c0_i32_0 : i32, i32, i32, i32
  }
}

</mosaic_0001>

<bundles_post_ra>
// kernel: tpu_custom_call.1
= control target key start
LH: loop header
LB: loop body
LE: loop exit
PB: predicated region body
PF: predicated region fallthrough
CT: control target
= control target key end

     0   :  { %7 = vsyncpa [#allocation3], 0  ;;  %s1034_s0 = inlined_call_operand.hbm [shape: f32[2,4,2,128], index: 0, kind: input, shape index: {}]   ;;  %s1035_s1 = inlined_call_operand.hbm [shape: f32[2,4,2,128], index: 1, kind: input, shape index: {}]   ;;  %s1036_s2 = inlined_call_operand.hbm [shape: f32[2,1,4,128], index: 2, kind: output, shape index: {}]  }
   0x1   :  { %9 = vsyncpa [#allocation3 + $0x1], 0 }
   0x2   :  { %10 = vsyncpa [#allocation6], 0 }
   0x3   :  { %12 = vsyncpa [#allocation6 + $0x1], 0 }
   0x4   :  { %13 = vsyncpa [#allocation4], 0 }
   0x5   :  { %15 = vsyncpa [#allocation4 + $0x1], 0  ;;  %s772_s9 = smov 0   ;;  %s774_s10 = smov 0  }
   0x6   :  { %s776_s11 = smov 0   ;;  %s778_s12 = smov 0  }
   0x7   :  { %s780_s13 = smov 0   ;;  %s782_s14 = smov 0  }
   0x8 LB: > { %s497_s15 = sadd.s32 4294967295, %s749_s14   ;;  %s498_s16 = sadd.s32 4294967294, %s749_s14   ;;  %s749_s14 = sphi %s782_s14, %s21_s14   ;;  %s745_s13 = sphi %s780_s13, %s1054_s13   ;;  %s741_s12 = sphi %s778_s12, %s1053_s12   ;;  %s737_s11 = sphi %s776_s11, %s1052_s11   ;;  %s733_s10 = sphi %s774_s10, %s1051_s10   ;;  %s729_s9 = sphi %s772_s9, %s1050_s9  }
   0x9   : > { %s40_s17 = sadd.s32 1, %s745_s13  ;;  %s55_s18 = sadd.s32 1, %s737_s11 }
   0xa   : > { %p42_p0 = scmp.ge.s32.totalorder %s40_s17, 2  ;;  %p62_p1 = scmp.ne.s32.totalorder %s737_s11, %s733_s10 }
   0xb   : > { %p63_p2 = scmp.eq.s32.totalorder %s749_s14, 0  ;;  %p68_p3 = scmp.ne.s32.totalorder %s733_s10, %s729_s9 }
   0xc   : > { %s1056_s17 = smov (%p42_p0, %s40_s17), 0  ;;  %p69_p5 = scmp.eq.s32.totalorder %s497_s15, 0 }
   0xd   : > { %p813_p4 = por %p63_p2, %p62_p1  ;;  %s50_s20 = ssub.s32 %s745_s13, %s1056_s17 }
   0xe   : > { %p128_p6 = scmp.eq.s32.totalorder %s497_s15, 1  ;;  %p53_p7 = scmp.eq.s32.totalorder %s50_s20, 0 }
   0xf   : > { %p819_p8 = por %p69_p5, %p68_p3  ;;  %p134_p10 = scmp.eq.s32.totalorder %s498_s16, 1 }
  0x10   : > { %p823_p9 = por %p128_p6, %p62_p1  ;;  %p534_p13 = scmp.lt.s32.totalorder %s749_s14, 2 }
  0x11   : > { %s1040_s21 = scalar_select %p819_p8, 1, 0 }
  0x12   : > { %s1041_s22 = scalar_select %p823_p9, 1, 0 }
  0x13   : > { %s828_s23 = scalar_select %p53_p7, %s737_s11, %s55_s18  }
  0x14   : > { %p830_p11 = por %p134_p10, %p68_p3  ;;  %s837_s25 = sand.u32 1, %s737_s11  }
  0x15   : > { %s501_s26 = sshll.u32 %s837_s25, 3  ;;  %s515_s27 = sshll.u32 %s745_s13, 7 }
  0x16   : > { %s1042_s24 = scalar_select %p830_p11, 1, 0 }
  0x17   : > { %s846_s30 = scalar_lea.hbm %s1034_s0, %s515_s27  ;;  %s158_s3 = scalar_lea.vmem [#allocation2], %s501_s26 }
  0x18   : > { %s169_s4 = sshll.u32 %s158_s3, 4  ;;  %p854_p0 = pnand %p534_p13, %p813_p4  ;;  %s850_s4 = int_to_ptr.vmem [resolvable:$true] %s169_s4 }
  0x19   : > { %s155_s6 = scalar_lea.sflag [#allocation3], %s837_s25  ;;  %s603_s7 = scalar_lea.hbm %s846_s30, 128 }
  0x1a   : > { %p604_p2 = scmp.ne.s32.totalorder %s846_s30, %s603_s7  ;;  %p605_p3 = pneg %p854_p0 }
  0x1b   : > { %s608_s16 = scalar_lea.hbm %s1034_s0, 256  ;;  %p609_p4 = scmp.lt.u32.totalorder %s846_s30, %s1034_s0 }
  0x1c   : > { %p606_p5 = pnand %p605_p3, %p604_p2  ;;  %p610_p7 = scmp.lt.u32.totalorder %s608_s16, %s603_s7 }
  0x1d   : > { %p612_p13 = scmp.lt.u32.totalorder %s603_s7, %s846_s30 }
  0x1e   : > { %p607_p6 = pneg %p606_p5  ;;  %p611_p10 = por %p610_p7, %p609_p4 }
  0x20   : > { %p613_p12 = por %p612_p13, %p611_p10 }
  0x22   : > { %p614_p1 = pnand %p613_p12, %p607_p6 }
  0x24   : > { %617 = shalt.err (!%p614_p1)
}
  0x25   : > { %s618_s20 = scalar_lea.vmem %s850_s4, 128  ;;  %s751_s28 = smov [#allocation2]  }
  0x26   : > { %p619_p2 = scmp.ne.s32.totalorder %s850_s4, %s618_s20  ;;  %s623_s29 = sshll.u32 %s751_s28, 4  ;;  %s624_s29 = int_to_ptr.vmem [resolvable:$false] %s623_s29 }
  0x27   : > { %s625_s3 = scalar_lea.vmem %s624_s29, 256  ;;  %p626_p9 = scmp.lt.s32.totalorder %s850_s4, %s624_s29 }
  0x28   : > { %p621_p5 = pnand %p619_p2, %p605_p3  ;;  %p627_p4 = scmp.lt.s32.totalorder %s625_s3, %s618_s20 }
  0x2a   : > { %p622_p11 = pneg %p621_p5  ;;  %p628_p7 = por %p627_p4, %p626_p9 }
  0x2c   : > { %p629_p10 = pnand %p628_p7, %p622_p11 }
  0x2e   : > { %632 = shalt.err (!%p629_p10)
}
  0x2f   : > { %s752_s7 = smov 32   ;;  %s753_s8 = smov 2  }
  0x30   : > { %526 = dma.hbm_to_vmem [thread:$0]  (!%p854_p0), %s846_s30, 128, %s850_s4, %s155_s6, %s752_s7, %s752_s7, %s753_s8  }
  0x31   : > { %p202_p9 = scmp.lt.s32.totalorder %s749_s14, 3  ;;  %s896_s18 = scalar_lea.hbm %s1035_s1, %s515_s27 }
  0x32   : > { %p1044_p11 = scmp.ge.s32.totalorder %s749_s14, 1  ;;  %s183_s20 = scalar_lea.vmem [#allocation5], %s501_s26 }
  0x33   : > { %s194_s28 = sshll.u32 %s183_s20, 4  ;;  %s180_s30 = scalar_lea.sflag [#allocation6], %s837_s25  ;;  %s906_s28 = int_to_ptr.vmem [resolvable:$true] %s194_s28 }
  0x34   : > { %p900_p12 = pnand %p1044_p11, %p202_p9  ;;  %s633_s4 = scalar_lea.hbm %s896_s18, 128 }
  0x35   : > { %p634_p1 = scmp.ne.s32.totalorder %s896_s18, %s633_s4  ;;  %s638_s29 = scalar_lea.hbm %s1035_s1, 256 }
  0x36   : > { %p639_p2 = scmp.lt.u32.totalorder %s896_s18, %s1035_s1  ;;  %p640_p5 = scmp.lt.u32.totalorder %s638_s29, %s633_s4 }
  0x37   : > { %p636_p6 = pnand %p634_p1, %p605_p3  ;;  %p642_p7 = scmp.lt.u32.totalorder %s633_s4, %s896_s18 }
  0x38   : > { %p641_p4 = por %p640_p5, %p639_p2 }
  0x39   : > { %p637_p13 = pneg %p636_p6 }
  0x3a   : > { %p643_p10 = por %p642_p7, %p641_p4 }
  0x3c   : > { %p644_p9 = pnand %p643_p10, %p637_p13 }
  0x3e   : > { %647 = shalt.err (!%p644_p9)
}
  0x3f   : > { %s648_s26 = scalar_lea.vmem %s906_s28, 128  ;;  %s754_s16 = smov [#allocation5]  }
  0x40   : > { %p649_p11 = scmp.ne.s32.totalorder %s906_s28, %s648_s26  ;;  %s653_s20 = sshll.u32 %s754_s16, 4  ;;  %s654_s20 = int_to_ptr.vmem [resolvable:$false] %s653_s20 }
  0x41   : > { %s655_s27 = scalar_lea.vmem %s654_s20, 256  ;;  %p656_p8 = scmp.lt.s32.totalorder %s906_s28, %s654_s20 }
  0x42   : > { %p651_p1 = pnand %p649_p11, %p605_p3  ;;  %p657_p2 = scmp.lt.s32.totalorder %s655_s27, %s648_s26 }
  0x44   : > { %p652_p6 = pneg %p651_p1  ;;  %p658_p5 = por %p657_p2, %p656_p8 }
  0x46   : > { %p659_p4 = pnand %p658_p5, %p652_p6 }
  0x48   : > { %662 = shalt.err (!%p659_p4)
}
  0x49   : > { %529 = dma.hbm_to_vmem [thread:$0]  (!%p854_p0), %s896_s18, 128, %s906_s28, %s180_s30, %s752_s7, %s752_s7, %s753_s8  }
  0x4a   : > { %206 = sbr.rel (%p900_p12) target bundleno = 154 (0x9a), region = 28  ;;  %s940_s4 = sand.u32 (!%p900_p12), 1, %s733_s10  }
  0x4b   : > { %s508_s6 = sshll.u32 (!%p900_p12), %s940_s4, 3  ;;  %s209_s29 = scalar_lea.sflag (!%p900_p12), [#allocation3], %s940_s4 }
  0x4c   : > { %s212_s5 = scalar_lea.vmem (!%p900_p12), [#allocation2], %s508_s6  ;;  %p1046_p8 = scmp.ne.s32.totalorder (!%p900_p12), %s1040_s21, 0 }
  0x51   : > { %716 = dma.done.wait (%p1046_p8), %s209_s29, 128  }
  0x52   : > { %718 = vsyncadd (%p1046_p8), %s209_s29, 4294967168  ;;  %s218_s25 = scalar_lea.sflag [#allocation6], %s940_s4  ;;  %s949_s7 = scalar_lea.vmem [#allocation5], %s508_s6 }
  0x53   : > { %720 = dma.done.wait (%p1046_p8), %s218_s25, 128  }
  0x54   : > { %722 = vsyncadd (%p1046_p8), %s218_s25, 4294967168  ;;  %s510_s8 = sshll.u32 %s940_s4, 2  ;;  %v755_v0 = vmov 0.0   ;;  %v258_v1 = vld [vmem:[%s212_s5] sm:$0x3]  ;;  %vm331_vm1 = vcmask 1041408  }
  0x55   : > { %s956_s18 = scalar_lea.vmem [#allocation7], %s510_s8  ;;  %v259_v2 = vld [vmem:[%s212_s5 + $0x2] sm:$0x3]  ;;  %v959_v3 = vld [vmem:[%s212_s5 + $0x4] sm:$0x3]  ;;  %v314_v35 = vmax.f32 %v258_v1, 0.0 }
  0x56   : > { %257 = vst [vmem:[%s956_s18] sm:$0xf] %v755_v0  ;;  %v961_v4 = vld [vmem:[%s212_s5 + $0x6] sm:$0x3]  ;;  %v266_v5 = vand.u32 2147483647, %v258_v1  ;;  %v315_v38 = vmax.f32 %v259_v2, 0.0 }
  0x57   : > { %v267_v6 = vand.u32 2147483647, %v259_v2  ;;  %v268_v7 = vand.u32 2147483647, %v959_v3  ;;  %v269_v8 = vand.u32 2147483647, %v961_v4 }
  0x58   : > { %v270_v9 = vsub.f32 0.0, %v266_v5  ;;  %v262_v27 = vld [vmem:[%s949_s7] sm:$0x3]  ;;  %v263_v29 = vld [vmem:[%s949_s7 + $0x2] sm:$0x3]  ;;  %v316_v41 = vmax.f32 %v959_v3, 0.0 }
  0x59   : > { %v271_v10 = vsub.f32 0.0, %v267_v6  ;;  %v272_v11 = vsub.f32 0.0, %v268_v7  ;;  %v273_v12 = vsub.f32 0.0, %v269_v8  ;;  %v264_v31 = vld [vmem:[%s949_s7 + $0x4] sm:$0x3]  ;;  %v318_v36 = vmul.f32 %v262_v27, %v258_v1  ;;  %s512_s21 = sshll.u32 %s741_s12, 6 }
  0x5a   : > { %v274_v13 = vmul.f32 1.442695, %v270_v9  ;;  %v265_v33 = vld [vmem:[%s949_s7 + $0x6] sm:$0x3]  ;;  %v319_v39 = vmul.f32 %v263_v29, %v259_v2  ;;  %v320_v42 = vmul.f32 %v264_v31, %v959_v3  ;;  %v317_v44 = vmax.f32 %v961_v4, 0.0  ;;  %s388_s19 = sshll.u32 %s956_s18, 4  ;;  %s984_s3 = scalar_lea.hbm %s1036_s2, %s512_s21  ;;  %s986_s19 = int_to_ptr.vmem [resolvable:$true] %s388_s19 }
  0x5b   : > { %v276_v14 = vmul.f32 1.442695, %v271_v10  ;;  %v278_v15 = vmul.f32 1.442695, %v272_v11  ;;  %v280_v16 = vmul.f32 1.442695, %v273_v12  ;;  %v321_v45 = vmul.f32 %v265_v33, %v961_v4 }
  0x5c   : > { %587 = vpow2.f32 %v274_v13  ;;  %v322_v48 = vsub.f32 %v314_v35, %v318_v36  ;;  %v323_v52 = vsub.f32 %v315_v38, %v319_v39  ;;  %v324_v56 = vsub.f32 %v316_v41, %v320_v42  ;;  %s374_s15 = scalar_lea.sflag [#allocation4], %s940_s4  ;;  %s663_s26 = scalar_lea.vmem %s986_s19, 64 }
  0x5d   : > { %589 = vpow2.f32 %v276_v14  ;;  %v325_v60 = vsub.f32 %v317_v44, %v321_v45  ;;  %vm364_vm5 = vcmask 1041409   ;;  %vm366_vm6 = vcmask 1042434   ;;  %p664_p0 = scmp.ne.s32.totalorder %s986_s19, %s663_s26  ;;  %p1047_p3 = scmp.ne.s32.totalorder %s1041_s22, 0 }
  0x5e   : > { %591 = vpow2.f32 %v278_v15  ;;  %vm368_vm7 = vcmask 1043459   ;;  %s756_s12 = smov [#allocation7]  }
  0x5f   : > { %593 = vpow2.f32 %v280_v16  ;;  %p665_p12 = pnand %p664_p0, %p1047_p3  ;;  %s667_s16 = sshll.u32 %s756_s12, 4  ;;  %s668_s16 = int_to_ptr.vmem [resolvable:$false] %s667_s16 }
  0x60   : > { %s669_s20 = scalar_lea.vmem %s668_s16, 128  ;;  %p670_p7 = scmp.lt.s32.totalorder %s986_s19, %s668_s16 }
  0x61   : > { %p666_p13 = pneg %p665_p12  ;;  %p671_p10 = scmp.lt.s32.totalorder %s669_s20, %s663_s26 }
  0x63   : > { %p672_p9 = por %p671_p10, %p670_p7 }
  0x65   : > { %p673_p11 = pnand %p672_p9, %p666_p13 }
  0x66   : > { %v588_v17 = vpop.eup %587 }
  0x67   : > { %v590_v18 = vpop.eup %589  ;;  %v298_v19 = vadd.f32 1.0, %v588_v17  ;;  %v286_v25 = vmul.f32 0.5, %v588_v17  ;;  %vm282_vm0 = vcmp.lt.f32.partialorder %v588_v17, 0.0001 }
  0x68   : > { %v592_v20 = vpop.eup %591  ;;  %v299_v21 = vadd.f32 1.0, %v590_v18  ;;  %v287_v26 = vmul.f32 0.5, %v590_v18  ;;  %vm283_vm2 = vcmp.lt.f32.partialorder %v590_v18, 0.0001 }
  0x69   : > { %v594_v22 = vpop.eup %593  ;;  %v300_v23 = vadd.f32 1.0, %v592_v20  ;;  %595 = vlog2.f32 %v298_v19  ;;  %v288_v28 = vmul.f32 0.5, %v592_v20  ;;  %v290_v32 = vmul.f32 %v588_v17, %v286_v25 }
  0x6a   : > { %v301_v24 = vadd.f32 1.0, %v594_v22  ;;  %597 = vlog2.f32 %v299_v21  ;;  %v289_v30 = vmul.f32 0.5, %v594_v22  ;;  %v291_v34 = vmul.f32 %v590_v18, %v287_v26 }
  0x6b   : > { %599 = vlog2.f32 %v300_v23  ;;  %v292_v37 = vmul.f32 %v592_v20, %v288_v28  ;;  %v294_v43 = vsub.f32 %v588_v17, %v290_v32  ;;  %vm284_vm3 = vcmp.lt.f32.partialorder %v592_v20, 0.0001  ;;  %v330_v32 = vld [vmem:[%s956_s18] sm:$0xf] }
  0x6c   : > { %601 = vlog2.f32 %v301_v24  ;;  %v293_v40 = vmul.f32 %v594_v22, %v289_v30  ;;  %v295_v47 = vsub.f32 %v590_v18, %v291_v34  ;;  %vm285_vm4 = vcmp.lt.f32.partialorder %v594_v22, 0.0001 }
  0x6d   : > { %v296_v50 = vsub.f32 %v592_v20, %v292_v37 }
  0x6e   : > { %v297_v54 = vsub.f32 %v594_v22, %v293_v40 }
  0x73   : > { %v596_v46 = vpop.eup %595 }
  0x74   : > { %v598_v49 = vpop.eup %597  ;;  %v303_v51 = vmul.f32 0.6931472, %v596_v46 }
  0x75   : > { %v600_v53 = vpop.eup %599  ;;  %v305_v55 = vmul.f32 0.6931472, %v598_v49 }
  0x76   : > { %v602_v57 = vpop.eup %601  ;;  %v307_v58 = vmul.f32 0.6931472, %v600_v53  ;;  %v310_v59 = vsel %vm282_vm0, %v294_v43, %v303_v51 }
  0x77   : > { %v309_v61 = vmul.f32 0.6931472, %v602_v57  ;;  %v311_v62 = vsel %vm283_vm2, %v295_v47, %v305_v55  ;;  %v326_v63 = vadd.f32 %v322_v48, %v310_v59 }
  0x78   : > { %v312_v0 = vsel %vm284_vm3, %v296_v50, %v307_v58  ;;  %v327_v1 = vadd.f32 %v323_v52, %v311_v62 }
  0x79   : > { %v313_v2 = vsel %vm285_vm4, %v297_v54, %v309_v61  ;;  %v328_v3 = vadd.f32 %v324_v56, %v312_v0  ;;  %v332_v4 = vsel %vm331_vm1, %v326_v63, 0.0 }
  0x7a   : > { %v329_v5 = vadd.f32 %v325_v60, %v313_v2  ;;  %v333_v6 = vrot.slane %v332_v4, 4  ;;  %v339_v7 = vsel %vm331_vm1, %v327_v1, 0.0 }
  0x7b   : > { %v340_v8 = vrot.slane %v339_v7, 4  ;;  %v346_v9 = vsel %vm331_vm1, %v328_v3, 0.0 }
  0x7c   : > { %v334_v10 = vadd.f32 %v333_v6, %v332_v4  ;;  %v347_v11 = vrot.slane %v346_v9, 4  ;;  %v353_v12 = vsel %vm331_vm1, %v329_v5, 0.0 }
  0x7d   : > { %v341_v13 = vadd.f32 %v340_v8, %v339_v7  ;;  %v354_v14 = vrot.slane %v353_v12, 4 }
  0x7e   : > { %v335_v15 = vrot.slane %v334_v10, 2  ;;  %v348_v16 = vadd.f32 %v347_v11, %v346_v9 }
  0x7f   : > { %v342_v17 = vrot.slane %v341_v13, 2  ;;  %v355_v18 = vadd.f32 %v354_v14, %v353_v12 }
  0x80   : > { %v336_v19 = vadd.f32 %v335_v15, %v334_v10  ;;  %v349_v20 = vrot.slane %v348_v16, 2 }
  0x81   : > { %v343_v21 = vadd.f32 %v342_v17, %v341_v13  ;;  %v356_v22 = vrot.slane %v355_v18, 2 }
  0x82   : > { %v337_v23 = vrot.slane %v336_v19, 1  ;;  %v350_v24 = vadd.f32 %v349_v20, %v348_v16 }
  0x83   : > { %v344_v25 = vrot.slane %v343_v21, 1  ;;  %v357_v26 = vadd.f32 %v356_v22, %v355_v18 }
  0x84   : > { %v338_v27 = vadd.f32 %v337_v23, %v336_v19  ;;  %v351_v28 = vrot.slane %v350_v24, 1 }
  0x85   : > { %v345_v29 = vadd.f32 %v344_v25, %v343_v21  ;;  %v358_v30 = vrot.slane %v357_v26, 1 }
  0x86   : > { %v352_v31 = vadd.f32 %v351_v28, %v350_v24 }
  0x87   : > { %v359_v33 = vadd.f32 %v358_v30, %v357_v26  ;;  %v365_v34 = vsel %vm364_vm5, %v345_v29, %v338_v27 }
  0x88   : > { %v367_v35 = vsel %vm366_vm6, %v352_v31, %v365_v34 }
  0x89   : > { %v369_v36 = vsel %vm368_vm7, %v359_v33, %v367_v35 }
  0x8a   : > { %v371_v37 = vadd.f32 %v369_v36, %v330_v32 }
  0x8c   : > { %372 = vst [vmem:[%s956_s18] sm:$0xf] %v371_v37 }
  0x8d   : > { %676 = shalt.err (!%p673_p11)
}
  0x8e   : > { %s677_s27 = scalar_lea.hbm %s984_s3, 64  ;;  %s681_s29 = scalar_lea.hbm %s1036_s2, 128 }
  0x8f   : > { %p678_p1 = scmp.ne.s32.totalorder %s984_s3, %s677_s27  ;;  %p682_p5 = scmp.lt.u32.totalorder %s984_s3, %s1036_s2 }
  0x90   : > { %p683_p4 = scmp.lt.u32.totalorder %s681_s29, %s677_s27  ;;  %p685_p0 = scmp.lt.u32.totalorder %s677_s27, %s984_s3 }
  0x91   : > { %p679_p6 = pnand %p678_p1, %p1047_p3 }
  0x92   : > { %p684_p8 = por %p683_p4, %p682_p5 }
  0x93   : > { %p680_p2 = pneg %p679_p6 }
  0x94   : > { %p686_p12 = por %p685_p0, %p684_p8 }
  0x96   : > { %p687_p13 = pnand %p686_p12, %p680_p2 }
  0x98   : > { %690 = shalt.err (!%p687_p13)
}
  0x99   : > { %521 = dma.vmem_to_hbm [thread:$0]  (%p1047_p3), %s986_s19, 64, %s984_s3, %s374_s15  }
  0x9a PF: > { %s400_s7 = sand.u32 1, %s729_s9   ;;  %p1048_p7 = scmp.ne.s32.totalorder %s1042_s24, 0 }
  0x9b   : > { %p1049_p10 = scmp.ge.s32.totalorder %s749_s14, 2  ;;  %s401_s8 = scalar_lea.sflag [#allocation4], %s400_s7 }
  0x9d   : > { %p531_p9 = pnand %p1049_p10, %p1048_p7 }
  0x9f   : > { %724 = dma.done.wait (!%p531_p9), %s401_s8, 64  }
  0xa0   : > { %726 = vsyncadd (!%p531_p9), %s401_s8, 4294967232  ;;  %s21_s14 = sadd.s32 1, %s749_s14   ;;  %s1050_s9 = smov %s733_s10 }
  0xa1   : > { %p18_p11 = scmp.ge.s32.totalorder %s21_s14, 4   ;;  %s1051_s10 = smov %s737_s11 }
  0xa2   : > { %s1052_s11 = smov %s828_s23  ;;  %s1053_s12 = smov %s745_s13 }
  0xa3   : > { %s1054_s13 = smov %s1056_s17  ;;  %20 = sbr.rel (!%p18_p11) target bundleno = 8 (0x8), region = 90 }
  0xaa   :  { %406 = vsyncpa [#allocation3], 1 }
  0xab   :  { %408 = vsyncpa [#allocation3 + $0x1], 1 }
  0xac   :  { %409 = vsyncpa [#allocation6], 1 }
  0xad   :  { %411 = vsyncpa [#allocation6 + $0x1], 1 }
  0xae   :  { %412 = vsyncpa [#allocation4], 1 }
  0xaf   :  { %414 = vsyncpa [#allocation4 + $0x1], 1 }

</bundles_post_ra>
